<compile_context>
chip_gen: v6e
topology: v6e:2x2x1
jax: 0.10.0
libtpu: 0.0.40
codegen_flags: <defaults>
</compile_context>

<pallas_src>
import functools

import jax
import jax.numpy as jnp
from jax.experimental import pallas as pl
from jax.experimental.pallas import tpu as pltpu


def _round_up(v, m):
    return (v + m - 1) // m * m


def _proj_kernel(x_ref, w_ref, h_ref, f_ref, *, fout_pad):
    # x_ref: (1, TQ, Fin)  w_ref: (Fin, fout_pad + 128)
    # h_ref: (1, TQ, fout_pad)  f_ref: (1, TQ, 128)
    acc = jnp.dot(x_ref[0], w_ref[...], preferred_element_type=jnp.float32)
    h_ref[0] = acc[:, :fout_pad].astype(h_ref.dtype)
    f_ref[0] = acc[:, fout_pad:]            # lanes 0/1 = (h@a1, h@a2); rest zero


def _attn_kernel(f1_ref, f2t_ref, adj_ref, h_ref, o_ref,
                 m_sc, l_sc, acc_sc, *, alpha, concat):
    # f1_ref: (1, TQ, 1) f32   f2t_ref: (1, 1, TK) f32   adj_ref: (TQ, TK) int8
    # h_ref:  (1, TK, Fout_pad)   o_ref: (1, TQ, Fout_pad)
    kj = pl.program_id(2)

    @pl.when(kj == 0)
    def _init():
        m_sc[...] = jnp.full_like(m_sc, -jnp.inf)
        l_sc[...] = jnp.zeros_like(l_sc)
        acc_sc[...] = jnp.zeros_like(acc_sc)

    f1 = f1_ref[0]                                    # (TQ, 1)
    f2 = f2t_ref[0]                                   # (1, TK)
    e = f1 + f2                                       # (TQ, TK)
    e = jnp.where(e > 0, e, alpha * e)                # LeakyReLU(alpha)
    adj = adj_ref[...].astype(jnp.float32)            # int8 mask -> f32
    e = jnp.where(adj > 0.0, e, jnp.float32(-9e15))   # mask non-edges (f32 scores)

    # Online softmax update (keep statistics and accumulator in f32).
    m_prev = m_sc[...]
    m_new = jnp.maximum(m_prev, jnp.max(e, axis=-1, keepdims=True))
    corr = jnp.exp(m_prev - m_new)
    p = jnp.exp(e - m_new)                            # (TQ, TK)
    l_sc[...] = corr * l_sc[...] + jnp.sum(p, axis=-1, keepdims=True)
    acc_sc[...] = corr * acc_sc[...] + jnp.dot(
        p.astype(h_ref.dtype), h_ref[0], preferred_element_type=jnp.float32)
    m_sc[...] = m_new

    # TODO(synk): F.dropout on the attention matrix is identity in eval mode
    # (training=False); training-mode dropout is not implemented.

    @pl.when(kj == pl.num_programs(2) - 1)
    def _finalize():
        l = l_sc[...]
        inv = pl.reciprocal(l, approx=True)           # EUP vrcp seed
        inv = inv * (2.0 - l * inv)                   # one Newton step -> ~f32 exact
        hp = acc_sc[...] * inv
        if concat:
            # ELU.  TODO(synk): jnp.expm1 would be marginally more accurate near 0.
            hp = jnp.where(hp > 0, hp, jnp.exp(jnp.minimum(hp, 0.0)) - 1.0)
        o_ref[0] = hp.astype(o_ref.dtype)


def graph_attention_layer(x, adj, W, a, *, alpha=0.2, concat=True, dropout=0.0,
                          compute_dtype=None, tile_n=256):
    """GAT layer forward (eval mode). compute_dtype=bf16 enables bf16 MXU operands."""
    del dropout  # eval mode: attention dropout is identity
    B, N, Fin = x.shape
    Fout = W.shape[1]
    out_dtype = x.dtype
    cdtype = x.dtype if compute_dtype is None else compute_dtype
    f32 = jnp.float32

    # --- padding / tiling (lane-dense outputs, tiles that fit every chip's VMEM) ---
    if N <= tile_n:
        TQ = TK = _round_up(N, 8)
        N_pad = TQ
    else:
        TQ = TK = tile_n
        N_pad = _round_up(N, tile_n)
    Fout_pad = _round_up(Fout, 128)          # lane-dense (unmasked) output stores
    F_tot = Fout_pad + 128                   # extra 128-lane slab for the score terms

    # --- fold the tiny h@a projection into x@W:  W_ext = [W | W@a1 | W@a2 | 0] ---
    W32 = W.astype(f32)
    a32 = a.astype(f32)
    Wa = W32 @ jnp.concatenate([a32[:Fout], a32[Fout:]], axis=1)   # (Fin, 2)
    W_ext = jnp.zeros((Fin, F_tot), f32)
    W_ext = W_ext.at[:, :Fout].set(W32)
    W_ext = W_ext.at[:, Fout_pad:Fout_pad + 2].set(Wa)
    W_ext = W_ext.astype(cdtype)

    x_p = jnp.pad(x.astype(cdtype), ((0, 0), (0, N_pad - N), (0, 0)))
    # adjacency only used as (adj > 0): stream a compact int8 mask (4x less HBM).
    adj_m = jnp.pad((adj > 0).astype(jnp.int8),
                    ((0, N_pad - N), (0, N_pad - N)))

    # ---------------- Kernel 1: fused projection ----------------
    h, f = pl.pallas_call(
        functools.partial(_proj_kernel, fout_pad=Fout_pad),
        out_shape=(jax.ShapeDtypeStruct((B, N_pad, Fout_pad), cdtype),
                   jax.ShapeDtypeStruct((B, N_pad, 128), f32)),
        grid_spec=pltpu.PrefetchScalarGridSpec(
            num_scalar_prefetch=0,
            grid=(B, N_pad // TQ),
            in_specs=[pl.BlockSpec((1, TQ, Fin), lambda b, m: (b, m, 0)),
                      pl.BlockSpec((Fin, F_tot), lambda b, m: (0, 0))],
            out_specs=[pl.BlockSpec((1, TQ, Fout_pad), lambda b, m: (b, m, 0)),
                       pl.BlockSpec((1, TQ, 128), lambda b, m: (b, m, 0))]),
        compiler_params=pltpu.CompilerParams(
            dimension_semantics=("parallel", "parallel")),
    )(x_p, W_ext)

    # Wrapper-side layout plumbing (done once, not per neighbor tile):
    f1 = f[:, :, 0:1]                                # (B, N_pad, 1)  query term
    f2t = jnp.transpose(f[:, :, 1:2], (0, 2, 1))     # (B, 1, N_pad)  neighbor term, lane-major

    # ---------------- Kernel 2: tiled attention + aggregation ----------------
    o = pl.pallas_call(
        functools.partial(_attn_kernel, alpha=float(alpha), concat=bool(concat)),
        out_shape=jax.ShapeDtypeStruct((B, N_pad, Fout_pad), out_dtype),
        grid_spec=pltpu.PrefetchScalarGridSpec(
            num_scalar_prefetch=0,
            grid=(B, N_pad // TQ, N_pad // TK),
            in_specs=[pl.BlockSpec((1, TQ, 1), lambda b, qi, kj: (b, qi, 0)),
                      pl.BlockSpec((1, 1, TK), lambda b, qi, kj: (b, 0, kj)),
                      pl.BlockSpec((TQ, TK), lambda b, qi, kj: (qi, kj)),
                      pl.BlockSpec((1, TK, Fout_pad), lambda b, qi, kj: (b, kj, 0))],
            out_specs=pl.BlockSpec((1, TQ, Fout_pad), lambda b, qi, kj: (b, qi, 0)),
            scratch_shapes=[pltpu.VMEM((TQ, 1), f32),          # running max m
                            pltpu.VMEM((TQ, 1), f32),          # running sum l
                            pltpu.VMEM((TQ, Fout_pad), f32)]),  # running acc = attn@h
        compiler_params=pltpu.CompilerParams(
            dimension_semantics=("parallel", "parallel", "arbitrary"),
            # explicit scoped-VMEM budget; tiles use far less, safe on v5e/v6e/v7x
            vmem_limit_bytes=32 * 1024 * 1024),
    )(f1, f2t, adj_m, h)

    return o[:, :N, :Fout]


def _reference(x, adj, W, a, alpha):
    """Pure-JAX reference mirroring the PyTorch forward (eval mode, concat=True)."""
    h = x @ W                                                      # (B, N, F)
    Fout = W.shape[1]
    a1, a2 = a[:Fout, 0], a[Fout:, 0]
    e = h @ a1[:, None] + jnp.swapaxes(h @ a2[:, None], 1, 2)      # (B, N, N)
    e = jnp.where(e > 0, e, alpha * e)
    e = jnp.where(adj[None] > 0, e, -9e15)
    attn = jax.nn.softmax(e, axis=2)
    hp = attn @ h
    return jax.nn.elu(hp)


if __name__ == "__main__":
    B, N, Fin, Fout = 2, 8, 16, 32
    alpha = 0.2

    key = jax.random.PRNGKey(0)
    k_x, k_w, k_a, k_adj = jax.random.split(key, 4)

    # Deterministic Xavier-uniform style init (gain=1.414), matching the module shapes.
    gain = 1.414
    lim_w = gain * (6.0 / (Fin + Fout)) ** 0.5
    W = jax.random.uniform(k_w, (Fin, Fout), jnp.float32, -lim_w, lim_w)
    lim_a = gain * (6.0 / (2 * Fout + 1)) ** 0.5
    a = jax.random.uniform(k_a, (2 * Fout, 1), jnp.float32, -lim_a, lim_a)

    x = jax.random.normal(k_x, (B, N, Fin), jnp.float32)
    # Random binary adjacency with self-loops.
    adj = (jax.random.uniform(k_adj, (N, N)) > 0.5).astype(jnp.float32)
    adj = jnp.maximum(adj, jnp.eye(N, dtype=jnp.float32))

    ref = _reference(x, adj, W, a, alpha)

    # f32 path (matches PyTorch f32 semantics).
    out = jax.block_until_ready(graph_attention_layer(x, adj, W, a, alpha=alpha))
    assert out.shape == (B, N, Fout)
    assert jnp.allclose(out, ref, atol=1e-3, rtol=1e-3), "f32 mismatch vs reference"

    # bf16 MXU-operand fast path (v6e/v7x); scores/softmax/ELU stay f32.
    out_bf = jax.block_until_ready(
        graph_attention_layer(x, adj, W, a, alpha=alpha, compute_dtype=jnp.bfloat16))
    assert out_bf.shape == (B, N, Fout)
    assert jnp.allclose(out_bf.astype(jnp.float32), ref, atol=0.1, rtol=0.1), \
        "bf16 path mismatch vs reference"

    print("KERNEL_OK")
</pallas_src>

<mosaic_0001>
module attributes {stable_mosaic.version = 11 : i64} {
  func.func @_proj_kernel(%arg0: i32, %arg1: i32, %arg2: memref<1x8x16xf32, #tpu.memory_space<vmem>>, %arg3: memref<16x256xf32, #tpu.memory_space<vmem>>, %arg4: memref<1x8x128xf32, #tpu.memory_space<vmem>>, %arg5: memref<1x8x128xf32, #tpu.memory_space<vmem>>) attributes {dimension_semantics = [#tpu.dimension_semantics<parallel>, #tpu.dimension_semantics<parallel>], iteration_bounds = array<i64: 2, 1>, scalar_prefetch = 0 : i64, scratch_operands = 0 : i64, tpu.core_type = #tpu.core_type<tc>, window_params = [{transform_indices = @transform_0, window_bounds = array<i64: 1, 8, 16>}, {pipeline_mode = #tpu.pipeline_mode<synchronous>, transform_indices = @transform_1, window_bounds = array<i64: 16, 256>}, {transform_indices = @transform_2, window_bounds = array<i64: 1, 8, 128>}, {transform_indices = @transform_3, window_bounds = array<i64: 1, 8, 128>}]} {
    %c0 = arith.constant 0 : index
    %c0_0 = arith.constant 0 : index
    %c0_1 = arith.constant 0 : index
    %0 = vector.load %arg2[%c0, %c0_0, %c0_1] : memref<1x8x16xf32, #tpu.memory_space<vmem>>, vector<1x8x16xf32>
    %1 = vector.shape_cast %0 : vector<1x8x16xf32> to vector<8x16xf32>
    %c0_2 = arith.constant 0 : index
    %c0_3 = arith.constant 0 : index
    %2 = vector.load %arg3[%c0_2, %c0_3] : memref<16x256xf32, #tpu.memory_space<vmem>>, vector<16x256xf32>
    %cst = arith.constant dense<0.000000e+00> : vector<8x256xf32>
    %3 = tpu.matmul %1, %2, %cst {dimension_numbers = #tpu.dot_dimension_numbers<[1], [0], [0], [1], [0, 0, 1, 1], [], []>} : vector<8x16xf32>, vector<16x256xf32>, vector<8x256xf32> -> vector<8x256xf32>
    %4 = vector.extract_strided_slice %3 {offsets = [0, 0], sizes = [8, 128], strides = [1, 1]} : vector<8x256xf32> to vector<8x128xf32>
    %c0_4 = arith.constant 0 : index
    %c0_5 = arith.constant 0 : index
    %c0_6 = arith.constant 0 : index
    %5 = vector.load %arg4[%c0_4, %c0_5, %c0_6] : memref<1x8x128xf32, #tpu.memory_space<vmem>>, vector<1x8x128xf32>
    %6 = vector.shape_cast %5 : vector<1x8x128xf32> to vector<8x128xf32>
    %7 = vector.shape_cast %4 : vector<8x128xf32> to vector<1x8x128xf32>
    tpu.vector_store %arg4[%c0_4, %c0_5, %c0_6], %7 {strides = array<i32>} : memref<1x8x128xf32, #tpu.memory_space<vmem>>, vector<1x8x128xf32>,
    %8 = vector.extract_strided_slice %3 {offsets = [0, 128], sizes = [8, 128], strides = [1, 1]} : vector<8x256xf32> to vector<8x128xf32>
    %c0_7 = arith.constant 0 : index
    %c0_8 = arith.constant 0 : index
    %c0_9 = arith.constant 0 : index
    %9 = vector.load %arg5[%c0_7, %c0_8, %c0_9] : memref<1x8x128xf32, #tpu.memory_space<vmem>>, vector<1x8x128xf32>
    %10 = vector.shape_cast %9 : vector<1x8x128xf32> to vector<8x128xf32>
    %11 = vector.shape_cast %8 : vector<8x128xf32> to vector<1x8x128xf32>
    tpu.vector_store %arg5[%c0_7, %c0_8, %c0_9], %11 {strides = array<i32>} : memref<1x8x128xf32, #tpu.memory_space<vmem>>, vector<1x8x128xf32>,
    return
  }
  func.func @transform_0(%arg0: i32, %arg1: i32) -> (i32, i32, i32) {
    %c0_i32 = arith.constant 0 : i32
    %c0_i32_0 = arith.constant 0 : i32
    return %arg0, %arg1, %c0_i32 : i32, i32, i32
  }
  func.func @transform_1(%arg0: i32, %arg1: i32) -> (i32, i32) {
    %c0_i32 = arith.constant 0 : i32
    %c0_i32_0 = arith.constant 0 : i32
    %c0_i32_1 = arith.constant 0 : i32
    return %c0_i32, %c0_i32_0 : i32, i32
  }
  func.func @transform_2(%arg0: i32, %arg1: i32) -> (i32, i32, i32) {
    %c0_i32 = arith.constant 0 : i32
    %c0_i32_0 = arith.constant 0 : i32
    return %arg0, %arg1, %c0_i32 : i32, i32, i32
  }
  func.func @transform_3(%arg0: i32, %arg1: i32) -> (i32, i32, i32) {
    %c0_i32 = arith.constant 0 : i32
    %c0_i32_0 = arith.constant 0 : i32
    return %arg0, %arg1, %c0_i32 : i32, i32, i32
  }
}

</mosaic_0001>

<bundles_post_ra>
// kernel: tpu_custom_call.1
= control target key start
LH: loop header
LB: loop body
LE: loop exit
PB: predicated region body
PF: predicated region fallthrough
CT: control target
= control target key end

     0   :  { %9 = vsyncpa [#allocation3], 0  ;;  %s983_s0 = inlined_call_operand.hbm [shape: f32[2,8,16], index: 0, kind: input, shape index: {}]   ;;  %s984_s1 = inlined_call_operand.hbm [shape: f32[16,256], index: 1, kind: input, shape index: {}]   ;;  %s985_s2 = inlined_call_operand.hbm [shape: f32[2,8,128], index: 2, kind: output, shape index: {0}]   ;;  %s986_s3 = inlined_call_operand.hbm [shape: f32[2,8,128], index: 3, kind: output, shape index: {1}]  }
   0x1   :  { %11 = vsyncpa [#allocation3 + $0x1], 0 }
   0x2   :  { %12 = vsyncpa [#allocation6], 0 }
   0x3   :  { %13 = vsyncpa [#allocation4], 0 }
   0x4   :  { %15 = vsyncpa [#allocation4 + $0x1], 0 }
   0x5   :  { %16 = vsyncpa [#allocation9], 0 }
   0x6   :  { %18 = vsyncpa [#allocation9 + $0x1], 0  ;;  %s767_s12 = smov 0   ;;  %s769_s13 = smov 0  }
   0x7   :  { %s771_s14 = smov 0   ;;  %s773_s15 = smov 0  }
   0x8   :  { %s775_s16 = smov 0   ;;  %s777_s17 = smov 0  }
   0x9 LB: > { %s470_s18 = sadd.s32 4294967295, %s738_s17   ;;  %s471_s19 = sadd.s32 4294967294, %s738_s17   ;;  %s738_s17 = sphi %s777_s17, %s24_s17   ;;  %s734_s16 = sphi %s775_s16, %s1004_s16   ;;  %s730_s15 = sphi %s773_s15, %s1003_s15   ;;  %s726_s14 = sphi %s771_s14, %s1002_s14   ;;  %s722_s13 = sphi %s769_s13, %s1001_s13   ;;  %s718_s12 = sphi %s767_s12, %s1000_s12  }
   0xa   : > { %p58_p0 = scmp.ne.s32.totalorder %s722_s13, %s718_s12  ;;  %p801_p1 = scmp.eq.s32.totalorder %s470_s18, 0 }
   0xb   : > { %p805_p2 = scmp.eq.s32.totalorder %s470_s18, 1  ;;  %p111_p3 = scmp.eq.s32.totalorder %s471_s19, 1 }
   0xc   : > { %p811_p4 = por %p801_p1, %p58_p0  ;;  %p472_p5 = scmp.ge.s32.totalorder %s738_s17, 1 }
   0xd   : > { %p816_p6 = por %p111_p3, %p58_p0  ;;  %p146_p7 = scmp.lt.s32.totalorder %s738_s17, 3 }
   0xe   : > { %s990_s22 = scalar_select %p811_p4, 1, 0 }
   0xf   : > { %s991_s23 = scalar_select %p816_p6, 1, 0 }
  0x10   : > { %p821_p8 = pnand %p472_p5, %p146_p7  ;;  %s740_s25 = smov [#allocation5]  }
  0x11   : > { %s158_s26 = sshll.u32 %s740_s25, 4  ;;  %s36_s28 = sadd.s32 1, %s734_s16  ;;  %s159_s26 = int_to_ptr.vmem [resolvable:$true] %s158_s26 }
  0x12   : > { %p499_p9 = pneg %p821_p8  ;;  %s581_s29 = scalar_lea.vmem %s159_s26, 512 }
  0x13   : > { %p582_p13 = scmp.ne.s32.totalorder %s159_s26, %s581_s29  ;;  %p589_p5 = scmp.lt.s32.totalorder %s159_s26, %s159_s26 }
  0x14   : > { %p830_p11 = pnand %p499_p9, %p801_p1  ;;  %p590_p7 = scmp.lt.s32.totalorder %s581_s29, %s581_s29 }
  0x16   : > { %p572_p12 = pneg %p830_p11  ;;  %p591_p6 = por %p590_p7, %p589_p5 }
  0x18   : > { %p584_p0 = pnand %p582_p13, %p572_p12 }
  0x1a   : > { %p585_p3 = pneg %p584_p0 }
  0x1c   : > { %p592_p4 = pnand %p591_p6, %p585_p3 }
  0x1e   : > { %595 = shalt.err (!%p592_p4)
}
  0x1f   : > { %s741_s30 = smov 256   ;;  %s742_s4 = smov 16  }
  0x20   : > { %502 = dma.hbm_to_vmem [thread:$0]  (!%p830_p11), %s984_s1, 512, %s159_s26, [#allocation6], %s741_s30, %s741_s30, %s742_s4  }
  0x21   : > { %p38_p6 = scmp.ge.s32.totalorder %s36_s28, 2  ;;  %s45_s7 = sadd.s32 1, %s726_s14 }
  0x22   : > { %p52_p4 = scmp.ne.s32.totalorder %s726_s14, %s722_s13  ;;  %p53_p9 = scmp.eq.s32.totalorder %s738_s17, 0 }
  0x23   : > { %s1006_s28 = smov (%p38_p6, %s36_s28), 0  ;;  %p515_p0 = scmp.lt.s32.totalorder %s738_s17, 2 }
  0x24   : > { %p848_p12 = por %p53_p9, %p52_p4  ;;  %p854_p13 = por %p805_p2, %p52_p4 }
  0x25   : > { %s40_s10 = ssub.s32 %s734_s16, %s1006_s28  ;;  %s172_s11 = sand.u32 1, %s726_s14  }
  0x26   : > { %p43_p11 = scmp.eq.s32.totalorder %s40_s10, 0  ;;  %s475_s18 = sshll.u32 %s172_s11, 3 }
  0x27   : > { %s476_s25 = sshll.u32 %s734_s16, 7  ;;  %s176_s30 = scalar_lea.vmem [#allocation2], %s475_s18 }
  0x28   : > { %s863_s19 = scalar_select %p43_p11, %s726_s14, %s45_s7  }
  0x29   : > { %s182_s29 = scalar_lea.hbm %s983_s0, %s476_s25  ;;  %s184_s4 = sshll.u32 %s176_s30, 4  ;;  %s185_s4 = int_to_ptr.vmem [resolvable:$true] %s184_s4 }
  0x2a   : > { %p871_p2 = pnand %p515_p0, %p848_p12  ;;  %s173_s5 = scalar_lea.sflag [#allocation3], %s172_s11 }
  0x2b   : > { %s609_s6 = scalar_lea.vmem %s185_s4, 128  ;;  %s743_s7 = smov [#allocation2]  }
  0x2c   : > { %p598_p3 = pneg %p871_p2  ;;  %p610_p5 = scmp.ne.s32.totalorder %s185_s4, %s609_s6 }
  0x2d   : > { %s614_s10 = sshll.u32 %s743_s7, 4  ;;  %s615_s10 = int_to_ptr.vmem [resolvable:$false] %s614_s10 }
  0x2e   : > { %p612_p7 = pnand %p610_p5, %p598_p3  ;;  %s616_s25 = scalar_lea.vmem %s615_s10, 256 }
  0x2f   : > { %p617_p4 = scmp.lt.s32.totalorder %s185_s4, %s615_s10  ;;  %p618_p9 = scmp.lt.s32.totalorder %s616_s25, %s609_s6 }
  0x30   : > { %p613_p6 = pneg %p612_p7 }
  0x31   : > { %p619_p11 = por %p618_p9, %p617_p4 }
  0x33   : > { %p620_p10 = pnand %p619_p11, %p613_p6 }
  0x35   : > { %623 = shalt.err (!%p620_p10)
}
  0x36   : > { %506 = dma.hbm_to_vmem [thread:$0]  (!%p871_p2), %s182_s29, 128, %s185_s4, %s173_s5  }
  0x37   : > { %193 = sbr.rel (%p821_p8) target bundleno = 297 (0x129), region = 28  ;;  %s882_s8 = sand.u32 (!%p821_p8), 1, %s722_s13  }
  0x38   : > { %s885_s11 = sshll.u32 (!%p821_p8), %s882_s8, 3  ;;  %s196_s18 = scalar_lea.sflag (!%p821_p8), [#allocation3], %s882_s8 }
  0x39   : > { %s199_s26 = scalar_lea.vmem (!%p821_p8), [#allocation2], %s885_s11  ;;  %p997_p12 = scmp.ne.s32.totalorder (!%p821_p8), %s990_s22, 0 }
  0x3c   : > { %701 = dma.done.wait (%p997_p12), %s196_s18, 128  }
  0x3d   : > { %703 = vsyncadd (%p997_p12), %s196_s18, 4294967168 }
  0x3e   : > { %705 = dma.done.wait (%p801_p1), [#allocation6], 512  }
  0x3f   : > { %707 = vsyncadd (%p801_p1), [#allocation6], 4294966784  ;;  %v744_v0 = vmov 0.0   ;;  %v235_v1 = vld [vmem:[#allocation5 + $0x18] sm:$0xff]  ;;  %v234_v2 = vld [vmem:[#allocation5 + $0x10] sm:$0xff]  ;;  %vm236_vm0 = vcmask 130048  }
  0x40   : > { %304 = vmatprep.mubr.f32.mxu0 %v744_v0  ;;  %v233_v3 = vld [vmem:[#allocation5 + $0x8] sm:$0xff]  ;;  %268 = vmatprep.subr.mxu0 %v235_v1  ;;  %v232_v4 = vld [vmem:[#allocation5] sm:$0xff]  ;;  %v231_v5 = vld [vmem:[%s199_s26] sm:$0xff]  ;;  %s223_s20 = scalar_lea.vmem [#allocation7], %s885_s11  ;;  %s485_s24 = sshll.u32 %s730_s15, 7 }
  0x41   : > { %269 = vmatpush1.msra.mxu0 %v234_v2  ;;  %s333_s22 = sshll.u32 %s223_s20, 4  ;;  %s230_s27 = scalar_lea.vmem [#allocation8], %s885_s11  ;;  %s902_s22 = int_to_ptr.vmem [resolvable:$true] %s333_s22 }
  0x42   : > { %270 = vmatprep.subr.mxu0 %v233_v3  ;;  %s347_s29 = sshll.u32 %s230_s27, 4  ;;  %s907_s21 = scalar_lea.hbm %s985_s2, %s485_s24  ;;  %s909_s29 = int_to_ptr.vmem [resolvable:$true] %s347_s29 }
  0x43   : > { %271 = vmatpush1.msra.mxu0 %v232_v4  ;;  %s914_s15 = scalar_lea.hbm %s986_s3, %s485_s24  ;;  %s314_s7 = scalar_lea.sflag [#allocation4], %s882_s8 }
  0x44   : > { %482 = vmatmul.mubr.msk.f32.vlgmr.msra.gmra.mxu0 %vm236_vm0, %v231_v5  ;;  %s624_s10 = scalar_lea.vmem %s902_s22, 128  ;;  %s745_s25 = smov [#allocation7]  }
  0x45   : > { %p625_p1 = scmp.ne.s32.totalorder %s902_s22, %s624_s10  ;;  %s628_s18 = sshll.u32 %s745_s25, 4  ;;  %s629_s18 = int_to_ptr.vmem [resolvable:$false] %s628_s18 }
  0x46   : > { %s630_s26 = scalar_lea.vmem %s629_s18, 256  ;;  %p631_p0 = scmp.lt.s32.totalorder %s902_s22, %s629_s18 }
  0x47   : > { %p626_p8 = pnand %p625_p1, %p854_p13  ;;  %p632_p2 = scmp.lt.s32.totalorder %s630_s26, %s624_s10 }
  0x49   : > { %p627_p10 = pneg %p626_p8  ;;  %p633_p3 = por %p632_p2, %p631_p0 }
  0x4b   : > { %p634_p5 = pnand %p633_p3, %p627_p10 }
 0x104   : > { %v306_v6 = vpop.f32.mrf.mxu0 }
 0x105   : > { %311 = vst [vmem:[%s223_s20] sm:$0xff] %v306_v6 }
 0x106   : > { %v308_v7 = vpop.f32.mrf.mxu0 }
 0x107   : > { %637 = shalt.err (!%p634_p5)
}
 0x108   : > { %s638_s20 = scalar_lea.hbm %s907_s21, 128  ;;  %s642_s4 = scalar_lea.hbm %s985_s2, 256 }
 0x109   : > { %p639_p7 = scmp.ne.s32.totalorder %s907_s21, %s638_s20  ;;  %p643_p9 = scmp.lt.s32.totalorder %s907_s21, %s985_s2 }
 0x10a   : > { %p644_p11 = scmp.lt.s32.totalorder %s642_s4, %s638_s20 }
 0x10b   : > { %p640_p6 = pnand %p639_p7, %p854_p13 }
 0x10c   : > { %p645_p12 = por %p644_p11, %p643_p9 }
 0x10d   : > { %p641_p4 = pneg %p640_p6 }
 0x10f   : > { %p646_p1 = pnand %p645_p12, %p641_p4 }
 0x111   : > { %649 = shalt.err (!%p646_p1)
}
 0x112   : > { %495 = dma.vmem_to_hbm [thread:$0]  (%p854_p13), %s902_s22, 128, %s907_s21, %s314_s7   ;;  %312 = vst [vmem:[%s230_s27] sm:$0xff] %v308_v7 }
 0x113   : > { %s319_s10 = scalar_lea.sflag [#allocation9], %s882_s8  ;;  %s650_s25 = scalar_lea.vmem %s909_s29, 128 }
 0x114   : > { %p651_p8 = scmp.ne.s32.totalorder %s909_s29, %s650_s25  ;;  %s746_s18 = smov [#allocation8]  }
 0x115   : > { %s654_s26 = sshll.u32 %s746_s18, 4  ;;  %s655_s26 = int_to_ptr.vmem [resolvable:$false] %s654_s26 }
 0x116   : > { %p652_p10 = pnand %p651_p8, %p854_p13  ;;  %s656_s20 = scalar_lea.vmem %s655_s26, 256 }
 0x117   : > { %p657_p2 = scmp.lt.s32.totalorder %s909_s29, %s655_s26  ;;  %p658_p3 = scmp.lt.s32.totalorder %s656_s20, %s650_s25 }
 0x118   : > { %p653_p0 = pneg %p652_p10 }
 0x119   : > { %p659_p5 = por %p658_p3, %p657_p2 }
 0x11b   : > { %p660_p7 = pnand %p659_p5, %p653_p0 }
 0x11d   : > { %663 = shalt.err (!%p660_p7)
}
 0x11e   : > { %s664_s11 = scalar_lea.hbm %s914_s15, 128  ;;  %s668_s27 = scalar_lea.hbm %s986_s3, 256 }
 0x11f   : > { %p665_p6 = scmp.ne.s32.totalorder %s914_s15, %s664_s11  ;;  %p669_p11 = scmp.lt.s32.totalorder %s914_s15, %s986_s3 }
 0x120   : > { %p670_p12 = scmp.lt.s32.totalorder %s668_s27, %s664_s11 }
 0x121   : > { %p666_p4 = pnand %p665_p6, %p854_p13 }
 0x122   : > { %p671_p1 = por %p670_p12, %p669_p11 }
 0x123   : > { %p667_p9 = pneg %p666_p4 }
 0x125   : > { %p672_p8 = pnand %p671_p1, %p667_p9 }
 0x127   : > { %675 = shalt.err (!%p672_p8)
}
 0x128   : > { %496 = dma.vmem_to_hbm [thread:$0]  (%p854_p13), %s909_s29, 128, %s914_s15, %s319_s10  }
 0x129 PF: > { %s359_s24 = sand.u32 1, %s718_s12   ;;  %p998_p10 = scmp.ne.s32.totalorder %s991_s23, 0 }
 0x12a   : > { %p999_p0 = scmp.ge.s32.totalorder %s738_s17, 2  ;;  %s360_s30 = scalar_lea.sflag [#allocation4], %s359_s24 }
 0x12c   : > { %p508_p2 = pnand %p999_p0, %p998_p10 }
 0x12e   : > { %p509_p3 = pneg %p508_p2 }
 0x130   : > { %709 = dma.done.wait (%p509_p3), %s360_s30, 128  }
 0x131   : > { %711 = vsyncadd (%p509_p3), %s360_s30, 4294967168  ;;  %s369_s4 = scalar_lea.sflag [#allocation9], %s359_s24 }
 0x132   : > { %713 = dma.done.wait (%p509_p3), %s369_s4, 128  }
 0x133   : > { %715 = vsyncadd (%p509_p3), %s369_s4, 4294967168  ;;  %s24_s17 = sadd.s32 1, %s738_s17   ;;  %s1000_s12 = smov %s722_s13 }
 0x134   : > { %p21_p5 = scmp.ge.s32.totalorder %s24_s17, 4   ;;  %s1001_s13 = smov %s726_s14 }
 0x135   : > { %s1002_s14 = smov %s863_s19  ;;  %s1003_s15 = smov %s734_s16 }
 0x136   : > { %s1004_s16 = smov %s1006_s28  ;;  %23 = sbr.rel (!%p21_p5) target bundleno = 9 (0x9), region = 94 }
 0x13b   :  { %374 = vsyncpa [#allocation3], 1 }
 0x13c   :  { %376 = vsyncpa [#allocation3 + $0x1], 1 }
 0x13d   :  { %377 = vsyncpa [#allocation6], 1 }
 0x13e   :  { %378 = vsyncpa [#allocation4], 1 }
 0x13f   :  { %380 = vsyncpa [#allocation4 + $0x1], 1 }
 0x140   :  { %381 = vsyncpa [#allocation9], 1 }
 0x141   :  { %383 = vsyncpa [#allocation9 + $0x1], 1 }

</bundles_post_ra>
